<compile_context>
chip_gen: v6e
topology: v6e:2x2x1
jax: 0.10.0
libtpu: 0.0.40
codegen_flags: <defaults>
</compile_context>

<pallas_src>
import functools

import jax
import jax.numpy as jnp
from jax import lax
from jax.experimental import pallas as pl
from jax.experimental.pallas import tpu as pltpu
import numpy as np


def _round_up(x, m):
    return ((x + m - 1) // m) * m


def _lstm_fc_softmax_kernel(x2d_ref, wih_ref, whh_ref, b_ref, wfc_ref,
                            bfc_ref, out_ref, hs_ref, *, T, H, Hk):
    """Fused LSTM + flatten + Linear + softmax.

    x2d_ref : (T*Bp, D)   time-major input rows, row = t*Bp + b
    wih_ref : (D, G)      W_ih.T, gates packed [i|f|g|o] in cols [0, 4H), G=128
    whh_ref : (Hk, G)     W_hh.T in rows [0, H), same gate packing
    b_ref   : (1, G)      b_ih + b_hh in cols [0, 4H)
    wfc_ref : (T*H, Rp)   W_fc.T, rows ordered exactly like torch.flatten
    bfc_ref : (1, Rp)     fc bias (-1e30 in padded columns)
    out_ref : (Bp, Rp)    softmax probabilities (rows/cols past B/R are junk)
    hs_ref  : (Bp, T*H)   VMEM scratch holding the flattened hidden states
    """
    Bp = x2d_ref.shape[0] // T

    # ---- hoisted input projection: one big matmul + bias (off the serial
    # recurrent path) ---------------------------------------------------------
    xproj = (jnp.dot(x2d_ref[...], wih_ref[...],
                     preferred_element_type=jnp.float32)
             + b_ref[...])                                  # (T*Bp, G)

    whh = whh_ref[...]                                      # (Hk, G)

    # Lanes [0, H) of the Hk-wide hidden tile carry real state; the rest is
    # padding that is forced to exactly 0 every step.
    hid_mask = lax.broadcasted_iota(jnp.int32, (Bp, Hk), 1) < H

    h = jnp.zeros((Bp, Hk), jnp.float32)
    c = jnp.zeros((Bp, Hk), jnp.float32)

    # ---- fully unrolled recurrent loop (T static & small) ------------------
    for t in range(T):
        gates = (xproj[t * Bp:(t + 1) * Bp]
                 + jnp.dot(h, whh, preferred_element_type=jnp.float32))
        # One sigmoid + one tanh over the whole packed gate vreg (2 EUP
        # launches), then cheap static lane slices per gate.  PyTorch gate
        # order [i|f|g|o] is preserved, each block of width H.
        sig = jax.nn.sigmoid(gates)
        tng = jnp.tanh(gates)
        i = sig[:, 0 * H:0 * H + Hk]
        f = sig[:, 1 * H:1 * H + Hk]
        g = tng[:, 2 * H:2 * H + Hk]
        o = sig[:, 3 * H:3 * H + Hk]
        # Padding lanes (>= H) would otherwise pick up neighbouring-gate
        # garbage; one masked select per step keeps c (and hence h) exactly 0
        # there, which the zero-padded whh rows / wfc rows rely on.
        c = jnp.where(hid_mask, f * c + i * g, 0.0)
        h = o * jnp.tanh(c)                                  # lanes >= H stay 0
        # flatten(x, 1) layout: h_t[j] lands at column t*H + j.
        hs_ref[:, t * H:(t + 1) * H] = h[:, :H]

    # ---- flatten + Linear as one matmul, then softmax -----------------------
    logits = (jnp.dot(hs_ref[...], wfc_ref[...],
                      preferred_element_type=jnp.float32)
              + bfc_ref[...])                                # (Bp, Rp)
    m = jnp.max(logits, axis=-1, keepdims=True)
    e = jnp.exp(logits - m)
    s = jnp.sum(e, axis=-1, keepdims=True)
    # Exact divide kept (instead of pl.reciprocal(approx=True)) to preserve
    # tight 1e-5 parity with the reference.
    out_ref[...] = e / s


def make_erin_forward(params, seq_len):
    """Pack weights once (host-side, numpy) and return a jitted forward(x)."""
    W_ih, W_hh, b_ih, b_hh, W_fc, b_fc = (np.asarray(p, np.float32)
                                          for p in params)
    H = W_hh.shape[1]
    D = W_ih.shape[1]
    R = W_fc.shape[0]
    T = seq_len
    assert W_fc.shape[1] == T * H

    # Fast packed-gate path requires all four gates in one 128-lane block.
    # TODO(synk): fall back to per-gate 128-lane blocks when H > 32.
    assert 4 * H <= 128, "packed-gate fast path requires hidden_size <= 32"

    Hk = _round_up(H, 8)          # sublane-padded hidden width (matmul LHS/K)
    G = 128                       # packed gate block width (lane-dense)
    Rp = _round_up(R, 128)        # lane-dense output width

    # ---- one-time weight repack (NOT in the per-call jitted path) ----------
    wih_p = np.zeros((D, G), np.float32)
    wih_p[:, :4 * H] = W_ih.T                                # gates [i|f|g|o]
    whh_p = np.zeros((Hk, G), np.float32)
    whh_p[:H, :4 * H] = W_hh.T
    b_p = np.zeros((1, G), np.float32)
    b_p[0, :4 * H] = b_ih + b_hh
    wfc_p = np.zeros((T * H, Rp), np.float32)
    wfc_p[:, :R] = W_fc.T                                    # flatten order
    bfc_p = np.full((1, Rp), -1e30, np.float32)              # mask padded cols
    bfc_p[0, :R] = b_fc

    wih_p = jnp.asarray(wih_p)
    whh_p = jnp.asarray(whh_p)
    b_p = jnp.asarray(b_p)
    wfc_p = jnp.asarray(wfc_p)
    bfc_p = jnp.asarray(bfc_p)

    kernel = functools.partial(_lstm_fc_softmax_kernel, T=T, H=H, Hk=Hk)
    vmem = pl.BlockSpec(memory_space=pltpu.MemorySpace.VMEM)

    def forward(x):
        B, Tx, Dx = x.shape
        assert Tx == T and Dx == D
        Bp = _round_up(B, 8)                                 # sublane multiple

        # time-major, batch-padded input as a single 2-D slab (row = t*Bp + b)
        xT = jnp.transpose(x, (1, 0, 2))                     # (T, B, D)
        xT = jnp.pad(xT, ((0, 0), (0, Bp - B), (0, 0)))      # (T, Bp, D)
        x2d = xT.reshape(T * Bp, D)                          # (T*Bp, D)

        out_p = pl.pallas_call(
            kernel,
            out_shape=jax.ShapeDtypeStruct((Bp, Rp), jnp.float32),
            in_specs=[vmem] * 6,
            out_specs=vmem,
            scratch_shapes=[pltpu.VMEM((Bp, T * H), jnp.float32)],
        )(x2d, wih_p, whh_p, b_p, wfc_p, bfc_p)
        return out_p[:B, :R]

    return jax.jit(forward)


def ref_forward(x, params):
    """Pure-JAX reference matching PyTorch nn.LSTM + flatten + Linear + softmax."""
    W_ih, W_hh, b_ih, b_hh, W_fc, b_fc = params
    B, T, D = x.shape
    H = W_hh.shape[1]

    def step(carry, x_t):
        h, c = carry
        gates = x_t @ W_ih.T + h @ W_hh.T + b_ih + b_hh
        i = jax.nn.sigmoid(gates[:, 0 * H:1 * H])
        f = jax.nn.sigmoid(gates[:, 1 * H:2 * H])
        g = jnp.tanh(gates[:, 2 * H:3 * H])
        o = jax.nn.sigmoid(gates[:, 3 * H:4 * H])
        c = f * c + i * g
        h = o * jnp.tanh(c)
        return (h, c), h

    h0 = jnp.zeros((B, H), jnp.float32)
    c0 = jnp.zeros((B, H), jnp.float32)
    (_, _), hs = lax.scan(step, (h0, c0), jnp.transpose(x, (1, 0, 2)))
    hs = jnp.transpose(hs, (1, 0, 2)).reshape(B, T * H)      # torch.flatten(x, 1)
    logits = hs @ W_fc.T + b_fc
    return jax.nn.softmax(logits, axis=1)


def init_params(key, in_size, hidden_size, seq_len, num_relations):
    """Deterministic PyTorch-style uniform init for LSTM and Linear."""
    ks = jax.random.split(key, 6)
    k_lstm = 1.0 / np.sqrt(hidden_size)
    k_fc = 1.0 / np.sqrt(seq_len * hidden_size)
    W_ih = jax.random.uniform(ks[0], (4 * hidden_size, in_size),
                              jnp.float32, -k_lstm, k_lstm)
    W_hh = jax.random.uniform(ks[1], (4 * hidden_size, hidden_size),
                              jnp.float32, -k_lstm, k_lstm)
    b_ih = jax.random.uniform(ks[2], (4 * hidden_size,),
                              jnp.float32, -k_lstm, k_lstm)
    b_hh = jax.random.uniform(ks[3], (4 * hidden_size,),
                              jnp.float32, -k_lstm, k_lstm)
    W_fc = jax.random.uniform(ks[4], (num_relations, seq_len * hidden_size),
                              jnp.float32, -k_fc, k_fc)
    b_fc = jax.random.uniform(ks[5], (num_relations,),
                              jnp.float32, -k_fc, k_fc)
    return (W_ih, W_hh, b_ih, b_hh, W_fc, b_fc)


if __name__ == "__main__":
    # Small shapes consistent with erin_model's forward:
    #   x: (batch, sequence_length, in_size)
    B, T, D, H, R = 2, 8, 32, 4, 8

    key = jax.random.PRNGKey(0)
    k_x, k_p = jax.random.split(key)
    x = jax.random.normal(k_x, (B, T, D), jnp.float32)
    params = init_params(k_p, in_size=D, hidden_size=H,
                         seq_len=T, num_relations=R)

    erin_forward = make_erin_forward(params, seq_len=T)   # packs weights ONCE

    out = jax.block_until_ready(erin_forward(x))
    ref = jax.block_until_ready(ref_forward(x, params))

    assert out.shape == (B, R)
    np.testing.assert_allclose(np.asarray(out), np.asarray(ref),
                               rtol=1e-5, atol=1e-5)
    # softmax rows sum to 1
    np.testing.assert_allclose(np.asarray(out).sum(axis=1),
                               np.ones(B), rtol=1e-5, atol=1e-5)
    print("KERNEL_OK")
</pallas_src>

<mosaic_0001>
module attributes {stable_mosaic.version = 11 : i64} {
  func.func @_lstm_fc_softmax_kernel(%arg0: memref<64x32xf32, #tpu.memory_space<vmem>>, %arg1: memref<32x128xf32, #tpu.memory_space<vmem>>, %arg2: memref<8x128xf32, #tpu.memory_space<vmem>>, %arg3: memref<1x128xf32, #tpu.memory_space<vmem>>, %arg4: memref<32x128xf32, #tpu.memory_space<vmem>>, %arg5: memref<1x128xf32, #tpu.memory_space<vmem>>, %arg6: memref<8x128xf32, #tpu.memory_space<vmem>>, %arg7: memref<8x32xf32, #tpu.memory_space<vmem>>) attributes {dimension_semantics = [], scalar_prefetch = 0 : i64, scratch_operands = 1 : i64, tpu.core_type = #tpu.core_type<tc>} {
    %c0 = arith.constant 0 : index
    %c0_0 = arith.constant 0 : index
    %0 = vector.load %arg0[%c0, %c0_0] : memref<64x32xf32, #tpu.memory_space<vmem>>, vector<64x32xf32>
    %c0_1 = arith.constant 0 : index
    %c0_2 = arith.constant 0 : index
    %1 = vector.load %arg1[%c0_1, %c0_2] : memref<32x128xf32, #tpu.memory_space<vmem>>, vector<32x128xf32>
    %cst = arith.constant dense<0.000000e+00> : vector<64x128xf32>
    %2 = tpu.matmul %0, %1, %cst {dimension_numbers = #tpu.dot_dimension_numbers<[1], [0], [0], [1], [0, 0, 1, 1], [], []>} : vector<64x32xf32>, vector<32x128xf32>, vector<64x128xf32> -> vector<64x128xf32>
    %c0_3 = arith.constant 0 : index
    %c0_4 = arith.constant 0 : index
    %3 = vector.load %arg3[%c0_3, %c0_4] : memref<1x128xf32, #tpu.memory_space<vmem>>, vector<1x128xf32>
    %4 = vector.broadcast %3 : vector<1x128xf32> to vector<64x128xf32>
    %5 = arith.addf %2, %4 : vector<64x128xf32>
    %c0_5 = arith.constant 0 : index
    %c0_6 = arith.constant 0 : index
    %6 = vector.load %arg2[%c0_5, %c0_6] : memref<8x128xf32, #tpu.memory_space<vmem>>, vector<8x128xf32>
    %7 = tpu.iota {dimensions = array<i32: 1>} : vector<8x8xi32>
    %c4_i32 = arith.constant 4 : i32
    %8 = vector.broadcast %c4_i32 : i32 to vector<8x8xi32>
    %9 = arith.cmpi slt, %7, %8 : vector<8x8xi32>
    %cst_7 = arith.constant 0.000000e+00 : f32
    %10 = vector.broadcast %cst_7 : f32 to vector<8x8xf32>
    %cst_8 = arith.constant 0.000000e+00 : f32
    %11 = vector.broadcast %cst_8 : f32 to vector<8x8xf32>
    %12 = vector.extract_strided_slice %5 {offsets = [0, 0], sizes = [8, 128], strides = [1, 1]} : vector<64x128xf32> to vector<8x128xf32>
    %cst_9 = arith.constant dense<0.000000e+00> : vector<8x128xf32>
    %13 = tpu.matmul %10, %6, %cst_9 {dimension_numbers = #tpu.dot_dimension_numbers<[1], [0], [0], [1], [0, 0, 1, 1], [], []>} : vector<8x8xf32>, vector<8x128xf32>, vector<8x128xf32> -> vector<8x128xf32>
    %14 = arith.addf %12, %13 : vector<8x128xf32>
    %15 = arith.negf %14 : vector<8x128xf32>
    %16 = math.exp %15 : vector<8x128xf32>
    %cst_10 = arith.constant 1.000000e+00 : f32
    %17 = vector.broadcast %cst_10 : f32 to vector<8x128xf32>
    %18 = arith.addf %17, %16 : vector<8x128xf32>
    %19 = arith.divf %17, %18 : vector<8x128xf32>
    %20 = math.tanh %14 : vector<8x128xf32>
    %21 = vector.extract_strided_slice %19 {offsets = [0, 0], sizes = [8, 8], strides = [1, 1]} : vector<8x128xf32> to vector<8x8xf32>
    %22 = vector.extract_strided_slice %19 {offsets = [0, 4], sizes = [8, 8], strides = [1, 1]} : vector<8x128xf32> to vector<8x8xf32>
    %23 = vector.extract_strided_slice %20 {offsets = [0, 8], sizes = [8, 8], strides = [1, 1]} : vector<8x128xf32> to vector<8x8xf32>
    %24 = vector.extract_strided_slice %19 {offsets = [0, 12], sizes = [8, 8], strides = [1, 1]} : vector<8x128xf32> to vector<8x8xf32>
    %25 = arith.mulf %22, %11 : vector<8x8xf32>
    %26 = arith.mulf %21, %23 : vector<8x8xf32>
    %27 = arith.addf %25, %26 : vector<8x8xf32>
    %cst_11 = arith.constant 0.000000e+00 : f32
    %28 = vector.broadcast %cst_11 : f32 to vector<8x8xf32>
    %29 = arith.select %9, %27, %28 : vector<8x8xi1>, vector<8x8xf32>
    %30 = math.tanh %29 : vector<8x8xf32>
    %31 = arith.mulf %24, %30 : vector<8x8xf32>
    %32 = vector.extract_strided_slice %31 {offsets = [0, 0], sizes = [8, 4], strides = [1, 1]} : vector<8x8xf32> to vector<8x4xf32>
    %c0_12 = arith.constant 0 : index
    %c0_13 = arith.constant 0 : index
    %33 = vector.load %arg7[%c0_12, %c0_13] : memref<8x32xf32, #tpu.memory_space<vmem>>, vector<8x4xf32>
    tpu.vector_store %arg7[%c0_12, %c0_13], %32 {strides = array<i32>} : memref<8x32xf32, #tpu.memory_space<vmem>>, vector<8x4xf32>,
    %34 = vector.extract_strided_slice %5 {offsets = [8, 0], sizes = [8, 128], strides = [1, 1]} : vector<64x128xf32> to vector<8x128xf32>
    %cst_14 = arith.constant dense<0.000000e+00> : vector<8x128xf32>
    %35 = tpu.matmul %31, %6, %cst_14 {dimension_numbers = #tpu.dot_dimension_numbers<[1], [0], [0], [1], [0, 0, 1, 1], [], []>} : vector<8x8xf32>, vector<8x128xf32>, vector<8x128xf32> -> vector<8x128xf32>
    %36 = arith.addf %34, %35 : vector<8x128xf32>
    %37 = arith.negf %36 : vector<8x128xf32>
    %38 = math.exp %37 : vector<8x128xf32>
    %cst_15 = arith.constant 1.000000e+00 : f32
    %39 = vector.broadcast %cst_15 : f32 to vector<8x128xf32>
    %40 = arith.addf %39, %38 : vector<8x128xf32>
    %41 = arith.divf %39, %40 : vector<8x128xf32>
    %42 = math.tanh %36 : vector<8x128xf32>
    %43 = vector.extract_strided_slice %41 {offsets = [0, 0], sizes = [8, 8], strides = [1, 1]} : vector<8x128xf32> to vector<8x8xf32>
    %44 = vector.extract_strided_slice %41 {offsets = [0, 4], sizes = [8, 8], strides = [1, 1]} : vector<8x128xf32> to vector<8x8xf32>
    %45 = vector.extract_strided_slice %42 {offsets = [0, 8], sizes = [8, 8], strides = [1, 1]} : vector<8x128xf32> to vector<8x8xf32>
    %46 = vector.extract_strided_slice %41 {offsets = [0, 12], sizes = [8, 8], strides = [1, 1]} : vector<8x128xf32> to vector<8x8xf32>
    %47 = arith.mulf %44, %29 : vector<8x8xf32>
    %48 = arith.mulf %43, %45 : vector<8x8xf32>
    %49 = arith.addf %47, %48 : vector<8x8xf32>
    %cst_16 = arith.constant 0.000000e+00 : f32
    %50 = vector.broadcast %cst_16 : f32 to vector<8x8xf32>
    %51 = arith.select %9, %49, %50 : vector<8x8xi1>, vector<8x8xf32>
    %52 = math.tanh %51 : vector<8x8xf32>
    %53 = arith.mulf %46, %52 : vector<8x8xf32>
    %54 = vector.extract_strided_slice %53 {offsets = [0, 0], sizes = [8, 4], strides = [1, 1]} : vector<8x8xf32> to vector<8x4xf32>
    %c0_17 = arith.constant 0 : index
    %c4 = arith.constant 4 : index
    %55 = vector.load %arg7[%c0_17, %c4] : memref<8x32xf32, #tpu.memory_space<vmem>>, vector<8x4xf32>
    tpu.vector_store %arg7[%c0_17, %c4], %54 {strides = array<i32>} : memref<8x32xf32, #tpu.memory_space<vmem>>, vector<8x4xf32>,
    %56 = vector.extract_strided_slice %5 {offsets = [16, 0], sizes = [8, 128], strides = [1, 1]} : vector<64x128xf32> to vector<8x128xf32>
    %cst_18 = arith.constant dense<0.000000e+00> : vector<8x128xf32>
    %57 = tpu.matmul %53, %6, %cst_18 {dimension_numbers = #tpu.dot_dimension_numbers<[1], [0], [0], [1], [0, 0, 1, 1], [], []>} : vector<8x8xf32>, vector<8x128xf32>, vector<8x128xf32> -> vector<8x128xf32>
    %58 = arith.addf %56, %57 : vector<8x128xf32>
    %59 = arith.negf %58 : vector<8x128xf32>
    %60 = math.exp %59 : vector<8x128xf32>
    %cst_19 = arith.constant 1.000000e+00 : f32
    %61 = vector.broadcast %cst_19 : f32 to vector<8x128xf32>
    %62 = arith.addf %61, %60 : vector<8x128xf32>
    %63 = arith.divf %61, %62 : vector<8x128xf32>
    %64 = math.tanh %58 : vector<8x128xf32>
    %65 = vector.extract_strided_slice %63 {offsets = [0, 0], sizes = [8, 8], strides = [1, 1]} : vector<8x128xf32> to vector<8x8xf32>
    %66 = vector.extract_strided_slice %63 {offsets = [0, 4], sizes = [8, 8], strides = [1, 1]} : vector<8x128xf32> to vector<8x8xf32>
    %67 = vector.extract_strided_slice %64 {offsets = [0, 8], sizes = [8, 8], strides = [1, 1]} : vector<8x128xf32> to vector<8x8xf32>
    %68 = vector.extract_strided_slice %63 {offsets = [0, 12], sizes = [8, 8], strides = [1, 1]} : vector<8x128xf32> to vector<8x8xf32>
    %69 = arith.mulf %66, %51 : vector<8x8xf32>
    %70 = arith.mulf %65, %67 : vector<8x8xf32>
    %71 = arith.addf %69, %70 : vector<8x8xf32>
    %cst_20 = arith.constant 0.000000e+00 : f32
    %72 = vector.broadcast %cst_20 : f32 to vector<8x8xf32>
    %73 = arith.select %9, %71, %72 : vector<8x8xi1>, vector<8x8xf32>
    %74 = math.tanh %73 : vector<8x8xf32>
    %75 = arith.mulf %68, %74 : vector<8x8xf32>
    %76 = vector.extract_strided_slice %75 {offsets = [0, 0], sizes = [8, 4], strides = [1, 1]} : vector<8x8xf32> to vector<8x4xf32>
    %c0_21 = arith.constant 0 : index
    %c8 = arith.constant 8 : index
    %77 = vector.load %arg7[%c0_21, %c8] : memref<8x32xf32, #tpu.memory_space<vmem>>, vector<8x4xf32>
    tpu.vector_store %arg7[%c0_21, %c8], %76 {strides = array<i32>} : memref<8x32xf32, #tpu.memory_space<vmem>>, vector<8x4xf32>,
    %78 = vector.extract_strided_slice %5 {offsets = [24, 0], sizes = [8, 128], strides = [1, 1]} : vector<64x128xf32> to vector<8x128xf32>
    %cst_22 = arith.constant dense<0.000000e+00> : vector<8x128xf32>
    %79 = tpu.matmul %75, %6, %cst_22 {dimension_numbers = #tpu.dot_dimension_numbers<[1], [0], [0], [1], [0, 0, 1, 1], [], []>} : vector<8x8xf32>, vector<8x128xf32>, vector<8x128xf32> -> vector<8x128xf32>
    %80 = arith.addf %78, %79 : vector<8x128xf32>
    %81 = arith.negf %80 : vector<8x128xf32>
    %82 = math.exp %81 : vector<8x128xf32>
    %cst_23 = arith.constant 1.000000e+00 : f32
    %83 = vector.broadcast %cst_23 : f32 to vector<8x128xf32>
    %84 = arith.addf %83, %82 : vector<8x128xf32>
    %85 = arith.divf %83, %84 : vector<8x128xf32>
    %86 = math.tanh %80 : vector<8x128xf32>
    %87 = vector.extract_strided_slice %85 {offsets = [0, 0], sizes = [8, 8], strides = [1, 1]} : vector<8x128xf32> to vector<8x8xf32>
    %88 = vector.extract_strided_slice %85 {offsets = [0, 4], sizes = [8, 8], strides = [1, 1]} : vector<8x128xf32> to vector<8x8xf32>
    %89 = vector.extract_strided_slice %86 {offsets = [0, 8], sizes = [8, 8], strides = [1, 1]} : vector<8x128xf32> to vector<8x8xf32>
    %90 = vector.extract_strided_slice %85 {offsets = [0, 12], sizes = [8, 8], strides = [1, 1]} : vector<8x128xf32> to vector<8x8xf32>
    %91 = arith.mulf %88, %73 : vector<8x8xf32>
    %92 = arith.mulf %87, %89 : vector<8x8xf32>
    %93 = arith.addf %91, %92 : vector<8x8xf32>
    %cst_24 = arith.constant 0.000000e+00 : f32
    %94 = vector.broadcast %cst_24 : f32 to vector<8x8xf32>
    %95 = arith.select %9, %93, %94 : vector<8x8xi1>, vector<8x8xf32>
    %96 = math.tanh %95 : vector<8x8xf32>
    %97 = arith.mulf %90, %96 : vector<8x8xf32>
    %98 = vector.extract_strided_slice %97 {offsets = [0, 0], sizes = [8, 4], strides = [1, 1]} : vector<8x8xf32> to vector<8x4xf32>
    %c0_25 = arith.constant 0 : index
    %c12 = arith.constant 12 : index
    %99 = vector.load %arg7[%c0_25, %c12] : memref<8x32xf32, #tpu.memory_space<vmem>>, vector<8x4xf32>
    tpu.vector_store %arg7[%c0_25, %c12], %98 {strides = array<i32>} : memref<8x32xf32, #tpu.memory_space<vmem>>, vector<8x4xf32>,
    %100 = vector.extract_strided_slice %5 {offsets = [32, 0], sizes = [8, 128], strides = [1, 1]} : vector<64x128xf32> to vector<8x128xf32>
    %cst_26 = arith.constant dense<0.000000e+00> : vector<8x128xf32>
    %101 = tpu.matmul %97, %6, %cst_26 {dimension_numbers = #tpu.dot_dimension_numbers<[1], [0], [0], [1], [0, 0, 1, 1], [], []>} : vector<8x8xf32>, vector<8x128xf32>, vector<8x128xf32> -> vector<8x128xf32>
    %102 = arith.addf %100, %101 : vector<8x128xf32>
    %103 = arith.negf %102 : vector<8x128xf32>
    %104 = math.exp %103 : vector<8x128xf32>
    %cst_27 = arith.constant 1.000000e+00 : f32
    %105 = vector.broadcast %cst_27 : f32 to vector<8x128xf32>
    %106 = arith.addf %105, %104 : vector<8x128xf32>
    %107 = arith.divf %105, %106 : vector<8x128xf32>
    %108 = math.tanh %102 : vector<8x128xf32>
    %109 = vector.extract_strided_slice %107 {offsets = [0, 0], sizes = [8, 8], strides = [1, 1]} : vector<8x128xf32> to vector<8x8xf32>
    %110 = vector.extract_strided_slice %107 {offsets = [0, 4], sizes = [8, 8], strides = [1, 1]} : vector<8x128xf32> to vector<8x8xf32>
    %111 = vector.extract_strided_slice %108 {offsets = [0, 8], sizes = [8, 8], strides = [1, 1]} : vector<8x128xf32> to vector<8x8xf32>
    %112 = vector.extract_strided_slice %107 {offsets = [0, 12], sizes = [8, 8], strides = [1, 1]} : vector<8x128xf32> to vector<8x8xf32>
    %113 = arith.mulf %110, %95 : vector<8x8xf32>
    %114 = arith.mulf %109, %111 : vector<8x8xf32>
    %115 = arith.addf %113, %114 : vector<8x8xf32>
    %cst_28 = arith.constant 0.000000e+00 : f32
    %116 = vector.broadcast %cst_28 : f32 to vector<8x8xf32>
    %117 = arith.select %9, %115, %116 : vector<8x8xi1>, vector<8x8xf32>
    %118 = math.tanh %117 : vector<8x8xf32>
    %119 = arith.mulf %112, %118 : vector<8x8xf32>
    %120 = vector.extract_strided_slice %119 {offsets = [0, 0], sizes = [8, 4], strides = [1, 1]} : vector<8x8xf32> to vector<8x4xf32>
    %c0_29 = arith.constant 0 : index
    %c16 = arith.constant 16 : index
    %121 = vector.load %arg7[%c0_29, %c16] : memref<8x32xf32, #tpu.memory_space<vmem>>, vector<8x4xf32>
    tpu.vector_store %arg7[%c0_29, %c16], %120 {strides = array<i32>} : memref<8x32xf32, #tpu.memory_space<vmem>>, vector<8x4xf32>,
    %122 = vector.extract_strided_slice %5 {offsets = [40, 0], sizes = [8, 128], strides = [1, 1]} : vector<64x128xf32> to vector<8x128xf32>
    %cst_30 = arith.constant dense<0.000000e+00> : vector<8x128xf32>
    %123 = tpu.matmul %119, %6, %cst_30 {dimension_numbers = #tpu.dot_dimension_numbers<[1], [0], [0], [1], [0, 0, 1, 1], [], []>} : vector<8x8xf32>, vector<8x128xf32>, vector<8x128xf32> -> vector<8x128xf32>
    %124 = arith.addf %122, %123 : vector<8x128xf32>
    %125 = arith.negf %124 : vector<8x128xf32>
    %126 = math.exp %125 : vector<8x128xf32>
    %cst_31 = arith.constant 1.000000e+00 : f32
    %127 = vector.broadcast %cst_31 : f32 to vector<8x128xf32>
    %128 = arith.addf %127, %126 : vector<8x128xf32>
    %129 = arith.divf %127, %128 : vector<8x128xf32>
    %130 = math.tanh %124 : vector<8x128xf32>
    %131 = vector.extract_strided_slice %129 {offsets = [0, 0], sizes = [8, 8], strides = [1, 1]} : vector<8x128xf32> to vector<8x8xf32>
    %132 = vector.extract_strided_slice %129 {offsets = [0, 4], sizes = [8, 8], strides = [1, 1]} : vector<8x128xf32> to vector<8x8xf32>
    %133 = vector.extract_strided_slice %130 {offsets = [0, 8], sizes = [8, 8], strides = [1, 1]} : vector<8x128xf32> to vector<8x8xf32>
    %134 = vector.extract_strided_slice %129 {offsets = [0, 12], sizes = [8, 8], strides = [1, 1]} : vector<8x128xf32> to vector<8x8xf32>
    %135 = arith.mulf %132, %117 : vector<8x8xf32>
    %136 = arith.mulf %131, %133 : vector<8x8xf32>
    %137 = arith.addf %135, %136 : vector<8x8xf32>
    %cst_32 = arith.constant 0.000000e+00 : f32
    %138 = vector.broadcast %cst_32 : f32 to vector<8x8xf32>
    %139 = arith.select %9, %137, %138 : vector<8x8xi1>, vector<8x8xf32>
    %140 = math.tanh %139 : vector<8x8xf32>
    %141 = arith.mulf %134, %140 : vector<8x8xf32>
    %142 = vector.extract_strided_slice %141 {offsets = [0, 0], sizes = [8, 4], strides = [1, 1]} : vector<8x8xf32> to vector<8x4xf32>
    %c0_33 = arith.constant 0 : index
    %c20 = arith.constant 20 : index
    %143 = vector.load %arg7[%c0_33, %c20] : memref<8x32xf32, #tpu.memory_space<vmem>>, vector<8x4xf32>
    tpu.vector_store %arg7[%c0_33, %c20], %142 {strides = array<i32>} : memref<8x32xf32, #tpu.memory_space<vmem>>, vector<8x4xf32>,
    %144 = vector.extract_strided_slice %5 {offsets = [48, 0], sizes = [8, 128], strides = [1, 1]} : vector<64x128xf32> to vector<8x128xf32>
    %cst_34 = arith.constant dense<0.000000e+00> : vector<8x128xf32>
    %145 = tpu.matmul %141, %6, %cst_34 {dimension_numbers = #tpu.dot_dimension_numbers<[1], [0], [0], [1], [0, 0, 1, 1], [], []>} : vector<8x8xf32>, vector<8x128xf32>, vector<8x128xf32> -> vector<8x128xf32>
    %146 = arith.addf %144, %145 : vector<8x128xf32>
    %147 = arith.negf %146 : vector<8x128xf32>
    %148 = math.exp %147 : vector<8x128xf32>
    %cst_35 = arith.constant 1.000000e+00 : f32
    %149 = vector.broadcast %cst_35 : f32 to vector<8x128xf32>
    %150 = arith.addf %149, %148 : vector<8x128xf32>
    %151 = arith.divf %149, %150 : vector<8x128xf32>
    %152 = math.tanh %146 : vector<8x128xf32>
    %153 = vector.extract_strided_slice %151 {offsets = [0, 0], sizes = [8, 8], strides = [1, 1]} : vector<8x128xf32> to vector<8x8xf32>
    %154 = vector.extract_strided_slice %151 {offsets = [0, 4], sizes = [8, 8], strides = [1, 1]} : vector<8x128xf32> to vector<8x8xf32>
    %155 = vector.extract_strided_slice %152 {offsets = [0, 8], sizes = [8, 8], strides = [1, 1]} : vector<8x128xf32> to vector<8x8xf32>
    %156 = vector.extract_strided_slice %151 {offsets = [0, 12], sizes = [8, 8], strides = [1, 1]} : vector<8x128xf32> to vector<8x8xf32>
    %157 = arith.mulf %154, %139 : vector<8x8xf32>
    %158 = arith.mulf %153, %155 : vector<8x8xf32>
    %159 = arith.addf %157, %158 : vector<8x8xf32>
    %cst_36 = arith.constant 0.000000e+00 : f32
    %160 = vector.broadcast %cst_36 : f32 to vector<8x8xf32>
    %161 = arith.select %9, %159, %160 : vector<8x8xi1>, vector<8x8xf32>
    %162 = math.tanh %161 : vector<8x8xf32>
    %163 = arith.mulf %156, %162 : vector<8x8xf32>
    %164 = vector.extract_strided_slice %163 {offsets = [0, 0], sizes = [8, 4], strides = [1, 1]} : vector<8x8xf32> to vector<8x4xf32>
    %c0_37 = arith.constant 0 : index
    %c24 = arith.constant 24 : index
    %165 = vector.load %arg7[%c0_37, %c24] : memref<8x32xf32, #tpu.memory_space<vmem>>, vector<8x4xf32>
    tpu.vector_store %arg7[%c0_37, %c24], %164 {strides = array<i32>} : memref<8x32xf32, #tpu.memory_space<vmem>>, vector<8x4xf32>,
    %166 = vector.extract_strided_slice %5 {offsets = [56, 0], sizes = [8, 128], strides = [1, 1]} : vector<64x128xf32> to vector<8x128xf32>
    %cst_38 = arith.constant dense<0.000000e+00> : vector<8x128xf32>
    %167 = tpu.matmul %163, %6, %cst_38 {dimension_numbers = #tpu.dot_dimension_numbers<[1], [0], [0], [1], [0, 0, 1, 1], [], []>} : vector<8x8xf32>, vector<8x128xf32>, vector<8x128xf32> -> vector<8x128xf32>
    %168 = arith.addf %166, %167 : vector<8x128xf32>
    %169 = arith.negf %168 : vector<8x128xf32>
    %170 = math.exp %169 : vector<8x128xf32>
    %cst_39 = arith.constant 1.000000e+00 : f32
    %171 = vector.broadcast %cst_39 : f32 to vector<8x128xf32>
    %172 = arith.addf %171, %170 : vector<8x128xf32>
    %173 = arith.divf %171, %172 : vector<8x128xf32>
    %174 = math.tanh %168 : vector<8x128xf32>
    %175 = vector.extract_strided_slice %173 {offsets = [0, 0], sizes = [8, 8], strides = [1, 1]} : vector<8x128xf32> to vector<8x8xf32>
    %176 = vector.extract_strided_slice %173 {offsets = [0, 4], sizes = [8, 8], strides = [1, 1]} : vector<8x128xf32> to vector<8x8xf32>
    %177 = vector.extract_strided_slice %174 {offsets = [0, 8], sizes = [8, 8], strides = [1, 1]} : vector<8x128xf32> to vector<8x8xf32>
    %178 = vector.extract_strided_slice %173 {offsets = [0, 12], sizes = [8, 8], strides = [1, 1]} : vector<8x128xf32> to vector<8x8xf32>
    %179 = arith.mulf %176, %161 : vector<8x8xf32>
    %180 = arith.mulf %175, %177 : vector<8x8xf32>
    %181 = arith.addf %179, %180 : vector<8x8xf32>
    %cst_40 = arith.constant 0.000000e+00 : f32
    %182 = vector.broadcast %cst_40 : f32 to vector<8x8xf32>
    %183 = arith.select %9, %181, %182 : vector<8x8xi1>, vector<8x8xf32>
    %184 = math.tanh %183 : vector<8x8xf32>
    %185 = arith.mulf %178, %184 : vector<8x8xf32>
    %186 = vector.extract_strided_slice %185 {offsets = [0, 0], sizes = [8, 4], strides = [1, 1]} : vector<8x8xf32> to vector<8x4xf32>
    %c0_41 = arith.constant 0 : index
    %c28 = arith.constant 28 : index
    %187 = vector.load %arg7[%c0_41, %c28] : memref<8x32xf32, #tpu.memory_space<vmem>>, vector<8x4xf32>
    tpu.vector_store %arg7[%c0_41, %c28], %186 {strides = array<i32>} : memref<8x32xf32, #tpu.memory_space<vmem>>, vector<8x4xf32>,
    %c0_42 = arith.constant 0 : index
    %c0_43 = arith.constant 0 : index
    %188 = vector.load %arg7[%c0_42, %c0_43] : memref<8x32xf32, #tpu.memory_space<vmem>>, vector<8x32xf32>
    %c0_44 = arith.constant 0 : index
    %c0_45 = arith.constant 0 : index
    %189 = vector.load %arg4[%c0_44, %c0_45] : memref<32x128xf32, #tpu.memory_space<vmem>>, vector<32x128xf32>
    %cst_46 = arith.constant dense<0.000000e+00> : vector<8x128xf32>
    %190 = tpu.matmul %188, %189, %cst_46 {dimension_numbers = #tpu.dot_dimension_numbers<[1], [0], [0], [1], [0, 0, 1, 1], [], []>} : vector<8x32xf32>, vector<32x128xf32>, vector<8x128xf32> -> vector<8x128xf32>
    %c0_47 = arith.constant 0 : index
    %c0_48 = arith.constant 0 : index
    %191 = vector.load %arg5[%c0_47, %c0_48] : memref<1x128xf32, #tpu.memory_space<vmem>>, vector<1x128xf32>
    %192 = vector.broadcast %191 : vector<1x128xf32> to vector<8x128xf32>
    %193 = arith.addf %190, %192 : vector<8x128xf32>
    %cst_49 = arith.constant dense<0xFF800000> : vector<8xf32>
    %194 = vector.multi_reduction <maximumf>, %193, %cst_49 [1] : vector<8x128xf32> to vector<8xf32>
    %195 = vector.shape_cast %194 : vector<8xf32> to vector<8x1xf32>
    %196 = vector.broadcast %195 : vector<8x1xf32> to vector<8x128xf32>
    %197 = arith.subf %193, %196 : vector<8x128xf32>
    %198 = math.exp %197 : vector<8x128xf32>
    %cst_50 = arith.constant dense<0.000000e+00> : vector<8xf32>
    %199 = vector.multi_reduction <add>, %198, %cst_50 [1] : vector<8x128xf32> to vector<8xf32>
    %200 = vector.shape_cast %199 : vector<8xf32> to vector<8x1xf32>
    %201 = vector.broadcast %200 : vector<8x1xf32> to vector<8x128xf32>
    %202 = arith.divf %198, %201 : vector<8x128xf32>
    %c0_51 = arith.constant 0 : index
    %c0_52 = arith.constant 0 : index
    %203 = vector.load %arg6[%c0_51, %c0_52] : memref<8x128xf32, #tpu.memory_space<vmem>>, vector<8x128xf32>
    tpu.vector_store %arg6[%c0_51, %c0_52], %202 {strides = array<i32>} : memref<8x128xf32, #tpu.memory_space<vmem>>, vector<8x128xf32>,
    return
  }
}

</mosaic_0001>

<bundles_post_ra>
// kernel: forward.1
= control target key start
LH: loop header
LB: loop body
LE: loop exit
PB: predicated region body
PF: predicated region fallthrough
CT: control target
= control target key end

     0   :  { %vm42_vm0 = vcmask 261120   ;;  %v1385_v2 = vmov 0.0   ;;  %vm1386_vm1 = vmmov 0   ;;  %s1387_s11 = smov 120   ;;  %s1388_s12 = smov 4   ;;  %v173_v25 = vlaneseq  ;;  %s1645_s1 = inlined_call_operand.vmem [shape: f32[32,128], index: 1, kind: input, shape index: {}]   ;;  %s1646_s0 = inlined_call_operand.vmem [shape: f32[64,32], index: 0, kind: input, shape index: {}]   ;;  %s1647_s2 = inlined_call_operand.vmem [shape: f32[8,128], index: 2, kind: input, shape index: {}]   ;;  %s1648_s3 = inlined_call_operand.vmem [shape: f32[1,128], index: 3, kind: input, shape index: {}]   ;;  %s1649_s4 = inlined_call_operand.vmem [shape: f32[32,128], index: 4, kind: input, shape index: {}]   ;;  %s1650_s5 = inlined_call_operand.vmem [shape: f32[1,128], index: 5, kind: input, shape index: {}]   ;;  %s1651_s6 = inlined_call_operand.vmem [shape: f32[8,128], index: 6, kind: output, shape index: {}]  }
   0x1   :  { %v34_v0 = vld [vmem:[%s1645_s1 + $0x18] sm:$0xff]  ;;  %v33_v1 = vld [vmem:[%s1645_s1 + $0x10] sm:$0xff]  ;;  %1257 = vmatprep.subr.mxu1 %v1385_v2  ;;  %1259 = vmatprep.mubr.msk.f32.mxu1 %vm1386_vm1, %v1385_v2  ;;  %v23_v3 = vld [vmem:[%s1646_s0] sm:$0xff]  ;;  %s1390_s13 = smov 12   ;;  %s1391_s14 = smov 116   ;;  %vm284_vm3 = vcmask 31744  }
   0x2   :  { %1237 = vmatprep.subr.mxu0 %v34_v0  ;;  %v32_v4 = vld [vmem:[%s1645_s1 + $0x8] sm:$0xff]  ;;  %1245 = vmatprep.mubr.msk.f32.mxu0 %vm42_vm0, %v23_v3  ;;  %v1448_v5 = vld [vmem:[%s1647_s2] sm:$0xff]  ;;  %v1474_v26 = vand.u32 127, %v173_v25  ;;  %vm176_vm4 = vcmask 64512   ;;  %v25_v50 = vld [vmem:[%s1646_s0 + $0x10] sm:$0xff]  ;;  %vm396_vm5 = vcmask 64544  }
   0x3   :  { %1238 = vmatpush3.msra.mxu0 %v34_v0  ;;  %1258 = vmatpush3.msra.mxu1 %v1448_v5  ;;  %v31_v6 = vld [vmem:[%s1645_s1] sm:$0xff]  ;;  %v24_v7 = vld [vmem:[%s1646_s0 + $0x8] sm:$0xff]  ;;  %v26_v51 = vld [vmem:[%s1646_s0 + $0x18] sm:$0xff]  ;;  %s1392_s30 = smov 8   ;;  %vm510_vm6 = vcmask 97344   ;;  %s1393_s1 = smov 16  }
   0x4   :  { %1239 = vmatprep.subr.mxu0 %v33_v1  ;;  %1260 = vmatmul.mubr.f32.vlgmr.msra.gmra.mxu1 %v1385_v2  ;;  %v1468_v11 = vld [vmem:[%s1648_s3] ss:$0 sm:$0xff]  ;;  %s1389_s3 = smov 124   ;;  %vm175_vm2 = vcmp.lt.s32.totalorder %v1474_v26, 4  ;;  %v1081_v26 = vld [vmem:[%s1649_s4 + $0x8] sm:$0xff]  ;;  %vm620_vm7 = vcmask 130144  }
   0x5   :  { %1240 = vmatpush3.msra.mxu0 %v33_v1  ;;  %1262 = vmatprep.subr.mxu1 %v1385_v2  ;;  %vm735_vm8 = vcmask 162944   ;;  %vm849_vm9 = vcmask 195744   ;;  %vm963_vm10 = vcmask 228544   ;;  %vm1077_vm11 = vcmask 261344  }
   0x6   :  { %1241 = vmatprep.subr.mxu0 %v32_v4  ;;  %1263 = vmatpush3.msra.mxu1 %v1448_v5 }
   0x7   :  { %1242 = vmatpush3.msra.mxu0 %v32_v4  ;;  %1264 = vmatprep.mubr.msk.f32.mxu1 %vm1386_vm1, %v1385_v2 }
   0x8   :  { %1243 = vmatprep.subr.mxu0 %v31_v6  ;;  %1267 = vmatprep.subr.mxu1 %v1385_v2 }
   0x9   :  { %1244 = vmatpush3.msra.mxu0 %v31_v6 }
   0xa   :  { %1246 = vmatmul.mubr.msk.f32.vlgmr.msra.gmra.mxu0 %vm42_vm0, %v24_v7  ;;  %1297 = vmatprep.subr.mxu0 %v1385_v2 }
   0xb   :  { %1248 = vmatprep.mubr.msk.f32.mxu0 %vm42_vm0, %v25_v50 }
   0xe   :  { %1249 = vmatmul.mubr.msk.f32.gmra.mxu0 %vm42_vm0, %v26_v51 }
  0xc4   :  { %v246_v8 = vpop.f32.mrf.mxu1 }
  0xc6   :  { %v1261_v9 = vpop.f32.mrf.mxu1 }
  0xca   :  { %v1247_v10 = vpop.f32.mrf.mxu0 }
  0xcb   :  { %v139_v33 = vadd.f32 %v1247_v10, %v1468_v11 }
  0xcc   :  { %v133_v12 = vpop.f32.mrf.mxu0 }
  0xcd   :  { %v134_v13 = vadd.f32 %v1468_v11, %v133_v12 }
  0xce   :  { %v1250_v56 = vpop.f32.mrf.mxu0 }
  0xcf   :  { %v250_v14 = vadd.f32 %v246_v8, %v134_v13 }
  0xd0   :  { %v143_v57 = vpop.f32.mrf.mxu0 }
  0xd1   :  { %1317 = vtanh.f32 %v250_v14  ;;  %v1187_v16 = vmul.f32 -1.442695, %v250_v14  ;;  %v144_v58 = vadd.f32 %v1468_v11, %v143_v57 }
  0xd3   :  { %1319 = vpow2.f32 %v1187_v16 }
  0xde   :  { %v1318_v15 = vpop.eup %1317 }
  0xdf   :  { %260 = vrot.lane.b32.xlu0 %v1318_v15, %s1387_s11 }
  0xe0   :  { %v1320_v17 = vpop.eup %1319 }
  0xe1   :  { %v254_v18 = vadd.f32 1.0, %v1320_v17 }
  0xe3   :  { %1321 = vrcp.f32 %v254_v18  ;;  %v149_v18 = vadd.f32 %v1250_v56, %v1468_v11 }
  0xf0   :  { %v1322_v19 = vpop.eup %1321 }
  0xf1   :  { %v258_v22 = vmul.f32 0.0, %v1322_v19 }
 0x151   :  { %v261_v20 = vpop.permute.xlu0 %260 }
 0x152   :  { %v263_v21 = vmul.f32 %v1322_v19, %v261_v20 }
 0x154   :  { %265 = vrot.lane.b32.xlu0 %v263_v21, %s1388_s12 }
 0x1c6   :  { %v266_v23 = vpop.permute.xlu0 %265 }
 0x1c7   :  { %v268_v24 = vadd.f32 %v266_v23, %v258_v22 }
 0x1c9   :  { %270 = vrot.lane.b32.xlu1 %v268_v24, %s1389_s3 }
 0x23b   :  { %v271_v27 = vpop.permute.xlu1 %270 }
 0x23c   :  { %v273_v28 = vsel %vm175_vm2, %v271_v27, 0.0 }
 0x23d   :  { %1323 = vtanh.f32 %v273_v28 }
 0x24a   :  { %v1324_v29 = vpop.eup %1323 }
 0x24b   :  { %276 = vrot.lane.b32.xlu1 %v1324_v29, %s1390_s13 }
 0x2bd   :  { %v277_v30 = vpop.permute.xlu1 %276 }
 0x2be   :  { %v279_v31 = vmul.f32 %v1322_v19, %v277_v30 }
 0x2c0   :  { %281 = vrot.lane.b32.xlu0 %v279_v31, %s1391_s14 }
 0x2c4   :  { %367 = vrot.lane.b32.xlu0 %v273_v28, %s1388_s12 }
 0x332   :  { %v282_v32 = vpop.permute.xlu0 %281 }
 0x333   :  { %285 = vst.msk [vmem:[#allocation2] sm:$0xff] %vm284_vm3, %v282_v32  ;;  %1265 = vmatmul.mubr.msk.f32.vlgmr.msra.gmra.mxu1 %vm176_vm4, %v282_v32 }
 0x334   :  { %1268 = vmatpush3.msra.mxu1 %v1448_v5  ;;  %1269 = vmatprep.mubr.msk.f32.mxu1 %vm1386_vm1, %v1385_v2 }
 0x335   :  { %1272 = vmatprep.subr.mxu1 %v1385_v2 }
 0x336   :  { %v368_v44 = vpop.permute.xlu0 %367 }
 0x3f3   :  { %v354_v34 = vpop.f32.mrf.mxu1 }
 0x3f4   :  { %v358_v35 = vadd.f32 %v354_v34, %v139_v33 }
 0x3f5   :  { %v1266_v36 = vpop.f32.mrf.mxu1 }
 0x3f6   :  { %1325 = vtanh.f32 %v358_v35  ;;  %v1189_v38 = vmul.f32 -1.442695, %v358_v35  ;;  %v27_v36 = vld [vmem:[%s1646_s0 + $0x20] sm:$0xff] }
 0x3f7   :  { %1251 = vmatprep.mubr.msk.f32.mxu0 %vm42_vm0, %v27_v36 }
 0x3f8   :  { %1327 = vpow2.f32 %v1189_v38 }
 0x403   :  { %v1326_v37 = vpop.eup %1325 }
 0x404   :  { %372 = vrot.lane.b32.xlu1 %v1326_v37, %s1387_s11  ;;  %v28_v37 = vld [vmem:[%s1646_s0 + $0x28] sm:$0xff] }
 0x405   :  { %v1328_v39 = vpop.eup %1327  ;;  %1252 = vmatmul.mubr.msk.f32.gmra.mxu0 %vm42_vm0, %v28_v37 }
 0x406   :  { %v362_v40 = vadd.f32 1.0, %v1328_v39 }
 0x408   :  { %1329 = vrcp.f32 %v362_v40 }
 0x415   :  { %v1330_v41 = vpop.eup %1329 }
 0x416   :  { %v370_v45 = vmul.f32 %v1330_v41, %v368_v44 }
 0x476   :  { %v373_v42 = vpop.permute.xlu1 %372 }
 0x477   :  { %v375_v43 = vmul.f32 %v1330_v41, %v373_v42 }
 0x479   :  { %377 = vrot.lane.b32.xlu1 %v375_v43, %s1388_s12 }
 0x4c5   :  { %v1253_v42 = vpop.f32.mrf.mxu0 }
 0x4c7   :  { %v153_v43 = vpop.f32.mrf.mxu0 }
 0x4c8   :  { %v154_v44 = vadd.f32 %v1468_v11, %v153_v43 }
 0x4eb   :  { %v378_v46 = vpop.permute.xlu1 %377 }
 0x4ec   :  { %v380_v47 = vadd.f32 %v378_v46, %v370_v45 }
 0x4ee   :  { %382 = vrot.lane.b32.xlu0 %v380_v47, %s1389_s3 }
 0x560   :  { %v383_v48 = vpop.permute.xlu0 %382 }
 0x561   :  { %v385_v49 = vsel %vm175_vm2, %v383_v48, 0.0 }
 0x562   :  { %1331 = vtanh.f32 %v385_v49 }
 0x56f   :  { %v1332_v52 = vpop.eup %1331 }
 0x570   :  { %388 = vrot.lane.b32.xlu1 %v1332_v52, %s1390_s13 }
 0x5e2   :  { %v389_v53 = vpop.permute.xlu1 %388 }
 0x5e3   :  { %v1502_v54 = vmul.f32 %v1330_v41, %v389_v53 }
 0x5e5   :  { %398 = vrot.lane.b32.xlu0 %v1502_v54, %s1391_s14 }
 0x5e9   :  { %481 = vrot.lane.b32.xlu0 %v385_v49, %s1388_s12 }
 0x657   :  { %v399_v55 = vpop.permute.xlu0 %398 }
 0x658   :  { %1270 = vmatmul.mubr.msk.f32.vlgmr.msra.gmra.mxu1 %vm176_vm4, %v399_v55 }
 0x659   :  { %1273 = vmatpush3.msra.mxu1 %v1448_v5  ;;  %1274 = vmatprep.mubr.msk.f32.mxu1 %vm1386_vm1, %v1385_v2 }
 0x65a   :  { %1277 = vmatprep.subr.mxu1 %v1385_v2 }
 0x65b   :  { %v482_v7 = vpop.permute.xlu0 %481 }
 0x718   :  { %v468_v59 = vpop.f32.mrf.mxu1 }
 0x719   :  { %v472_v60 = vadd.f32 %v468_v59, %v144_v58 }
 0x71a   :  { %v1271_v61 = vpop.f32.mrf.mxu1 }
 0x71b   :  { %1333 = vtanh.f32 %v472_v60  ;;  %v1191_v63 = vmul.f32 -1.442695, %v472_v60 }
 0x71d   :  { %1335 = vpow2.f32 %v1191_v63 }
 0x728   :  { %v1334_v62 = vpop.eup %1333 }
 0x729   :  { %486 = vrot.lane.b32.xlu1 %v1334_v62, %s1387_s11 }
 0x72a   :  { %v1336_v0 = vpop.eup %1335 }
 0x72b   :  { %v476_v1 = vadd.f32 1.0, %v1336_v0 }
 0x72d   :  { %1337 = vrcp.f32 %v476_v1 }
 0x73a   :  { %v1338_v3 = vpop.eup %1337 }
 0x73b   :  { %v484_v8 = vmul.f32 %v1338_v3, %v482_v7 }
 0x79b   :  { %v487_v4 = vpop.permute.xlu1 %486 }
 0x79c   :  { %v489_v6 = vmul.f32 %v1338_v3, %v487_v4 }
 0x79e   :  { %491 = vrot.lane.b32.xlu1 %v489_v6, %s1388_s12 }
 0x810   :  { %v492_v9 = vpop.permute.xlu1 %491 }
 0x811   :  { %v494_v10 = vadd.f32 %v492_v9, %v484_v8 }
 0x813   :  { %496 = vrot.lane.b32.xlu0 %v494_v10, %s1389_s3 }
 0x885   :  { %v497_v12 = vpop.permute.xlu0 %496 }
 0x886   :  { %v499_v13 = vsel %vm175_vm2, %v497_v12, 0.0 }
 0x887   :  { %1339 = vtanh.f32 %v499_v13 }
 0x894   :  { %v1340_v14 = vpop.eup %1339 }
 0x895   :  { %502 = vrot.lane.b32.xlu1 %v1340_v14, %s1390_s13 }
 0x907   :  { %v503_v15 = vpop.permute.xlu1 %502 }
 0x908   :  { %v1519_v16 = vmul.f32 %v1338_v3, %v503_v15  ;;  %v159_v3 = vadd.f32 %v1253_v42, %v1468_v11 }
 0x90a   :  { %512 = vrot.lane.b32.xlu0 %v1519_v16, %s1391_s14 }
 0x90e   :  { %595 = vrot.lane.b32.xlu0 %v499_v13, %s1388_s12 }
 0x97c   :  { %v513_v17 = vpop.permute.xlu0 %512 }
 0x97d   :  { %1275 = vmatmul.mubr.msk.f32.vlgmr.msra.gmra.mxu1 %vm176_vm4, %v513_v17 }
 0x97e   :  { %1278 = vmatpush3.msra.mxu1 %v1448_v5  ;;  %1279 = vmatprep.mubr.msk.f32.mxu1 %vm1386_vm1, %v1385_v2 }
 0x97f   :  { %1282 = vmatprep.subr.mxu1 %v1385_v2 }
 0x980   :  { %v596_v30 = vpop.permute.xlu0 %595 }
 0xa3d   :  { %v582_v19 = vpop.f32.mrf.mxu1 }
 0xa3e   :  { %v586_v20 = vadd.f32 %v582_v19, %v149_v18 }
 0xa3f   :  { %v1276_v21 = vpop.f32.mrf.mxu1 }
 0xa40   :  { %1341 = vtanh.f32 %v586_v20  ;;  %v1193_v23 = vmul.f32 -1.442695, %v586_v20 }
 0xa42   :  { %1343 = vpow2.f32 %v1193_v23  ;;  %v29_v23 = vld [vmem:[%s1646_s0 + $0x30] sm:$0xff] }
 0xa43   :  { %1254 = vmatprep.mubr.msk.f32.mxu0 %vm42_vm0, %v29_v23 }
 0xa4d   :  { %v1342_v22 = vpop.eup %1341 }
 0xa4e   :  { %600 = vrot.lane.b32.xlu1 %v1342_v22, %s1387_s11 }
 0xa4f   :  { %v1344_v24 = vpop.eup %1343 }
 0xa50   :  { %v590_v25 = vadd.f32 1.0, %v1344_v24  ;;  %v30_v24 = vld [vmem:[%s1646_s0 + $0x38] sm:$0xff] }
 0xa51   :  { %1255 = vmatmul.mubr.msk.f32.gmra.mxu0 %vm42_vm0, %v30_v24 }
 0xa52   :  { %1345 = vrcp.f32 %v590_v25  ;;  %1305 = vmatprep.mubr.msk.f32.mxu0 %vm1386_vm1, %v1385_v2 }
 0xa5f   :  { %v1346_v27 = vpop.eup %1345 }
 0xa60   :  { %v598_v31 = vmul.f32 %v1346_v27, %v596_v30 }
 0xac0   :  { %v601_v28 = vpop.permute.xlu1 %600 }
 0xac1   :  { %v603_v29 = vmul.f32 %v1346_v27, %v601_v28 }
 0xac3   :  { %605 = vrot.lane.b32.xlu1 %v603_v29, %s1388_s12 }
 0xb11   :  { %v1256_v30 = vpop.f32.mrf.mxu0 }
 0xb35   :  { %v606_v32 = vpop.permute.xlu1 %605 }
 0xb36   :  { %v608_v33 = vadd.f32 %v606_v32, %v598_v31  ;;  %v163_v31 = vpop.f32.mrf.mxu0 }
 0xb37   :  { %v164_v32 = vadd.f32 %v1468_v11, %v163_v31 }
 0xb38   :  { %610 = vrot.lane.b32.xlu0 %v608_v33, %s1389_s3 }
 0xbaa   :  { %v611_v34 = vpop.permute.xlu0 %610 }
 0xbab   :  { %v613_v35 = vsel %vm175_vm2, %v611_v34, 0.0 }
 0xbac   :  { %1347 = vtanh.f32 %v613_v35 }
 0xbb9   :  { %v1348_v38 = vpop.eup %1347 }
 0xbba   :  { %616 = vrot.lane.b32.xlu1 %v1348_v38, %s1390_s13 }
 0xc2c   :  { %v617_v39 = vpop.permute.xlu1 %616 }
 0xc2d   :  { %v1544_v40 = vmul.f32 %v1346_v27, %v617_v39 }
 0xc2f   :  { %623 = vrot.lane.b32.xlu0 %v1544_v40, %s1391_s14 }
 0xc33   :  { %706 = vrot.lane.b32.xlu0 %v613_v35, %s1388_s12 }
 0xca1   :  { %v624_v41 = vpop.permute.xlu0 %623 }
 0xca2   :  { %1280 = vmatmul.mubr.msk.f32.vlgmr.msra.gmra.mxu1 %vm176_vm4, %v624_v41 }
 0xca3   :  { %1283 = vmatpush3.msra.mxu1 %v1448_v5  ;;  %1284 = vmatprep.mubr.msk.f32.mxu1 %vm1386_vm1, %v1385_v2 }
 0xca4   :  { %1287 = vmatprep.subr.mxu1 %v1385_v2 }
 0xca5   :  { %v707_v56 = vpop.permute.xlu0 %706 }
 0xd62   :  { %v693_v45 = vpop.f32.mrf.mxu1 }
 0xd63   :  { %v697_v46 = vadd.f32 %v693_v45, %v154_v44 }
 0xd64   :  { %v1281_v47 = vpop.f32.mrf.mxu1 }
 0xd65   :  { %1349 = vtanh.f32 %v697_v46  ;;  %v1195_v49 = vmul.f32 -1.442695, %v697_v46 }
 0xd67   :  { %1351 = vpow2.f32 %v1195_v49 }
 0xd72   :  { %v1350_v48 = vpop.eup %1349 }
 0xd73   :  { %711 = vrot.lane.b32.xlu1 %v1350_v48, %s1387_s11 }
 0xd74   :  { %v1352_v50 = vpop.eup %1351 }
 0xd75   :  { %v701_v51 = vadd.f32 1.0, %v1352_v50 }
 0xd77   :  { %1353 = vrcp.f32 %v701_v51 }
 0xd84   :  { %v1354_v52 = vpop.eup %1353 }
 0xd85   :  { %v709_v57 = vmul.f32 %v1354_v52, %v707_v56 }
 0xde5   :  { %v712_v53 = vpop.permute.xlu1 %711 }
 0xde6   :  { %v714_v55 = vmul.f32 %v1354_v52, %v712_v53  ;;  %v169_v53 = vadd.f32 %v1256_v30, %v1468_v11 }
 0xde8   :  { %716 = vrot.lane.b32.xlu1 %v714_v55, %s1388_s12 }
 0xe5a   :  { %v717_v58 = vpop.permute.xlu1 %716 }
 0xe5b   :  { %v719_v59 = vadd.f32 %v717_v58, %v709_v57 }
 0xe5d   :  { %721 = vrot.lane.b32.xlu0 %v719_v59, %s1389_s3 }
 0xecf   :  { %v722_v60 = vpop.permute.xlu0 %721 }
 0xed0   :  { %v724_v61 = vsel %vm175_vm2, %v722_v60, 0.0 }
 0xed1   :  { %1355 = vtanh.f32 %v724_v61 }
 0xede   :  { %v1356_v62 = vpop.eup %1355 }
 0xedf   :  { %727 = vrot.lane.b32.xlu1 %v1356_v62, %s1390_s13 }
 0xf51   :  { %v728_v63 = vpop.permute.xlu1 %727 }
 0xf52   :  { %v1561_v0 = vmul.f32 %v1354_v52, %v728_v63 }
 0xf54   :  { %737 = vrot.lane.b32.xlu0 %v1561_v0, %s1391_s14 }
 0xf58   :  { %820 = vrot.lane.b32.xlu0 %v724_v61, %s1388_s12 }
 0xfc6   :  { %v738_v1 = vpop.permute.xlu0 %737 }
 0xfc7   :  { %1285 = vmatmul.mubr.msk.f32.vlgmr.msra.gmra.mxu1 %vm176_vm4, %v738_v1 }
 0xfc8   :  { %1288 = vmatpush3.msra.mxu1 %v1448_v5  ;;  %1289 = vmatprep.mubr.msk.f32.mxu1 %vm1386_vm1, %v1385_v2 }
 0xfc9   :  { %1292 = vmatprep.subr.mxu1 %v1385_v2 }
 0xfca   :  { %v821_v17 = vpop.permute.xlu0 %820 }
0x1087   :  { %v807_v4 = vpop.f32.mrf.mxu1 }
0x1088   :  { %v811_v6 = vadd.f32 %v807_v4, %v159_v3 }
0x1089   :  { %v1286_v7 = vpop.f32.mrf.mxu1 }
0x108a   :  { %1357 = vtanh.f32 %v811_v6  ;;  %v1197_v9 = vmul.f32 -1.442695, %v811_v6 }
0x108c   :  { %1359 = vpow2.f32 %v1197_v9 }
0x1097   :  { %v1358_v8 = vpop.eup %1357 }
0x1098   :  { %825 = vrot.lane.b32.xlu1 %v1358_v8, %s1387_s11 }
0x1099   :  { %v1360_v10 = vpop.eup %1359 }
0x109a   :  { %v815_v12 = vadd.f32 1.0, %v1360_v10  ;;  %v1083_v10 = vld [vmem:[%s1649_s4 + $0x18] sm:$0xff] }
0x109b   :  { %1298 = vmatpush3.msra.mxu0 %v1083_v10 }
0x109c   :  { %1361 = vrcp.f32 %v815_v12  ;;  %1299 = vmatprep.subr.mxu0 %v1385_v2  ;;  %v1080_v12 = vld [vmem:[%s1649_s4] sm:$0xff] }
0x10a9   :  { %v1362_v13 = vpop.eup %1361 }
0x10aa   :  { %v823_v18 = vmul.f32 %v1362_v13, %v821_v17 }
0x110a   :  { %v826_v14 = vpop.permute.xlu1 %825 }
0x110b   :  { %v828_v15 = vmul.f32 %v1362_v13, %v826_v14 }
0x110d   :  { %830 = vrot.lane.b32.xlu1 %v828_v15, %s1388_s12 }
0x117f   :  { %v831_v19 = vpop.permute.xlu1 %830 }
0x1180   :  { %v833_v20 = vadd.f32 %v831_v19, %v823_v18 }
0x1182   :  { %835 = vrot.lane.b32.xlu0 %v833_v20, %s1389_s3  ;;  %v1202_v20 = vld [vmem:[%s1650_s5] ss:$0 sm:$0xff] }
0x11f4   :  { %v836_v21 = vpop.permute.xlu0 %835 }
0x11f5   :  { %v838_v22 = vsel %vm175_vm2, %v836_v21, 0.0 }
0x11f6   :  { %1363 = vtanh.f32 %v838_v22 }
0x1203   :  { %v1364_v25 = vpop.eup %1363 }
0x1204   :  { %841 = vrot.lane.b32.xlu1 %v1364_v25, %s1390_s13 }
0x1276   :  { %v842_v27 = vpop.permute.xlu1 %841 }
0x1277   :  { %v1588_v28 = vmul.f32 %v1362_v13, %v842_v27 }
0x1279   :  { %851 = vrot.lane.b32.xlu0 %v1588_v28, %s1391_s14 }
0x127d   :  { %934 = vrot.lane.b32.xlu0 %v838_v22, %s1388_s12 }
0x12eb   :  { %v852_v29 = vpop.permute.xlu0 %851 }
0x12ec   :  { %1290 = vmatmul.mubr.msk.f32.vlgmr.msra.gmra.mxu1 %vm176_vm4, %v852_v29 }
0x12ed   :  { %1293 = vmatpush3.msra.mxu1 %v1448_v5  ;;  %1294 = vmatprep.mubr.msk.f32.mxu1 %vm1386_vm1, %v1385_v2 }
0x12ef   :  { %v935_v43 = vpop.permute.xlu0 %934 }
0x13ac   :  { %v921_v33 = vpop.f32.mrf.mxu1 }
0x13ad   :  { %v925_v34 = vadd.f32 %v921_v33, %v164_v32 }
0x13ae   :  { %v1291_v35 = vpop.f32.mrf.mxu1 }
0x13af   :  { %1365 = vtanh.f32 %v925_v34  ;;  %v1199_v37 = vmul.f32 -1.442695, %v925_v34 }
0x13b1   :  { %1367 = vpow2.f32 %v1199_v37 }
0x13bc   :  { %v1366_v36 = vpop.eup %1365 }
0x13bd   :  { %939 = vrot.lane.b32.xlu1 %v1366_v36, %s1387_s11 }
0x13be   :  { %v1368_v38 = vpop.eup %1367 }
0x13bf   :  { %v929_v39 = vadd.f32 1.0, %v1368_v38 }
0x13c1   :  { %1369 = vrcp.f32 %v929_v39 }
0x13ce   :  { %v1370_v5 = vpop.eup %1369 }
0x13cf   :  { %v937_v44 = vmul.f32 %v1370_v5, %v935_v43 }
0x142f   :  { %v940_v41 = vpop.permute.xlu1 %939 }
0x1430   :  { %v942_v42 = vmul.f32 %v1370_v5, %v940_v41 }
0x1432   :  { %944 = vrot.lane.b32.xlu1 %v942_v42, %s1388_s12 }
0x14a4   :  { %v945_v45 = vpop.permute.xlu1 %944 }
0x14a5   :  { %v947_v46 = vadd.f32 %v945_v45, %v937_v44 }
0x14a7   :  { %949 = vrot.lane.b32.xlu0 %v947_v46, %s1389_s3 }
0x1519   :  { %v950_v47 = vpop.permute.xlu0 %949 }
0x151a   :  { %v952_v48 = vsel %vm175_vm2, %v950_v47, 0.0 }
0x151b   :  { %1371 = vtanh.f32 %v952_v48 }
0x1528   :  { %v1372_v49 = vpop.eup %1371 }
0x1529   :  { %955 = vrot.lane.b32.xlu1 %v1372_v49, %s1390_s13 }
0x159b   :  { %v956_v50 = vpop.permute.xlu1 %955 }
0x159c   :  { %v958_v51 = vmul.f32 %v1370_v5, %v956_v50 }
0x159e   :  { %965 = vrot.lane.b32.xlu0 %v958_v51, %s1391_s14 }
0x15a2   :  { %1048 = vrot.lane.b32.xlu0 %v952_v48, %s1388_s12 }
0x1610   :  { %v966_v52 = vpop.permute.xlu0 %965 }
0x1611   :  { %1295 = vmatmul.mubr.msk.f32.vlgmr.msra.gmra.mxu1 %vm176_vm4, %v966_v52 }
0x1614   :  { %v1049_v3 = vpop.permute.xlu0 %1048 }
0x16d1   :  { %v1035_v55 = vpop.f32.mrf.mxu1 }
0x16d2   :  { %v1039_v56 = vadd.f32 %v1035_v55, %v169_v53 }
0x16d3   :  { %v1296_v57 = vpop.f32.mrf.mxu1 }
0x16d4   :  { %1373 = vtanh.f32 %v1039_v56  ;;  %v1201_v59 = vmul.f32 -1.442695, %v1039_v56 }
0x16d6   :  { %1375 = vpow2.f32 %v1201_v59 }
0x16e1   :  { %v1374_v58 = vpop.eup %1373 }
0x16e2   :  { %1053 = vrot.lane.b32.xlu1 %v1374_v58, %s1387_s11 }
0x16e3   :  { %v1376_v60 = vpop.eup %1375 }
0x16e4   :  { %v1043_v61 = vadd.f32 1.0, %v1376_v60 }
0x16e6   :  { %1377 = vrcp.f32 %v1043_v61 }
0x16f3   :  { %v1378_v62 = vpop.eup %1377 }
0x16f4   :  { %v1051_v4 = vmul.f32 %v1378_v62, %v1049_v3 }
0x1754   :  { %v1054_v63 = vpop.permute.xlu1 %1053 }
0x1755   :  { %v1056_v1 = vmul.f32 %v1378_v62, %v1054_v63 }
0x1757   :  { %1058 = vrot.lane.b32.xlu1 %v1056_v1, %s1388_s12 }
0x17c9   :  { %v1059_v11 = vpop.permute.xlu1 %1058 }
0x17ca   :  { %v1061_v6 = vadd.f32 %v1059_v11, %v1051_v4 }
0x17cc   :  { %1063 = vrot.lane.b32.xlu0 %v1061_v6, %s1389_s3 }
0x17d0   :  { %393 = vrot.lane.b32.xlu0 %v1502_v54, %s1387_s11  ;;  %v1082_v54 = vld [vmem:[%s1649_s4 + $0x10] sm:$0xff] }
0x17d1   :  { %1300 = vmatpush3.msra.mxu0 %v1082_v54 }
0x17d2   :  { %1301 = vmatprep.subr.mxu0 %v1385_v2 }
0x17d3   :  { %1302 = vmatpush3.msra.mxu0 %v1081_v26 }
0x17d4   :  { %732 = vrot.lane.b32.xlu0 %v1561_v0, %s1388_s12  ;;  %1303 = vmatprep.subr.mxu0 %v1385_v2 }
0x17d5   :  { %1304 = vmatpush3.msra.mxu0 %v1080_v12 }
0x17d8   :  { %960 = vrot.lane.b32.xlu0 %v958_v51, %s1390_s13 }
0x183e   :  { %v1064_v7 = vpop.permute.xlu0 %1063 }
0x183f   :  { %v1066_v8 = vsel %vm175_vm2, %v1064_v7, 0.0 }
0x1840   :  { %1379 = vtanh.f32 %v1066_v8 }
0x1842   :  { %v394_v9 = vpop.permute.xlu0 %393 }
0x1843   :  { %397 = vst.msk [vmem:[#allocation2] sm:$0xff] %vm396_vm5, %v394_v9 }
0x1846   :  { %v733_v15 = vpop.permute.xlu0 %732 }
0x184a   :  { %v961_v18 = vpop.permute.xlu0 %960 }
0x184d   :  { %v1380_v0 = vpop.eup %1379 }
0x184e   :  { %1069 = vrot.lane.b32.xlu1 %v1380_v0, %s1390_s13 }
0x1852   :  { %507 = vrot.lane.b32.xlu1 %v1519_v16, %s1389_s3 }
0x1856   :  { %846 = vrot.lane.b32.xlu1 %v1588_v28, %s1392_s30 }
0x18c0   :  { %v1070_v13 = vpop.permute.xlu1 %1069 }
0x18c1   :  { %v1072_v14 = vmul.f32 %v1378_v62, %v1070_v13 }
0x18c3   :  { %1074 = vrot.lane.b32.xlu1 %v1072_v14, %s1393_s1 }
0x18c4   :  { %v508_v16 = vpop.permute.xlu1 %507 }
0x18c5   :  { %511 = vst.msk [vmem:[#allocation2] sm:$0xff] %vm510_vm6, %v508_v16 }
0x18c6   :  { %621 = vst.msk [vmem:[#allocation2] sm:$0xff] %vm620_vm7, %v1544_v40 }
0x18c7   :  { %736 = vst.msk [vmem:[#allocation2] sm:$0xff] %vm735_vm8, %v733_v15 }
0x18c8   :  { %v847_v17 = vpop.permute.xlu1 %846 }
0x18c9   :  { %850 = vst.msk [vmem:[#allocation2] sm:$0xff] %vm849_vm9, %v847_v17 }
0x18ca   :  { %964 = vst.msk [vmem:[#allocation2] sm:$0xff] %vm963_vm10, %v961_v18 }
0x1935   :  { %v1075_v2 = vpop.permute.xlu1 %1074 }
0x1936   :  { %1078 = vst.msk [vmem:[#allocation2] sm:$0xff] %vm1077_vm11, %v1075_v2 }
0x193d   :  { %v1079_v19 = vld [vmem:[#allocation2] sm:$0xff] }
0x193e   :  { %1306 = vmatmul.mubr.msk.f32.vlgmr.msra.gmra.mxu0 %vm42_vm0, %v1079_v19 }
0x19fe   :  { %v1160_v21 = vpop.f32.mrf.mxu0 }
0x19ff   :  { %v1161_v22 = vadd.f32 %v1202_v20, %v1160_v21 }
0x1a00   :  { %v1307_v40 = vpop.f32.mrf.mxu0 }
0x1a01   :  { %1164 = vmax.xlane.f32.xlu0 %v1161_v22 }
0x1a8a   :  { %v1165_v23 = vpop.xlane.xlu0 %1164 }
0x1a8b   :  { %v1166_v24 = vsub.f32 %v1161_v22, %v1165_v23 }
0x1a8d   :  { %v1167_v25 = vmul.f32 1.442695, %v1166_v24 }
0x1a8f   :  { %1381 = vpow2.f32 %v1167_v25 }
0x1a9c   :  { %v1382_v27 = vpop.eup %1381 }
0x1a9d   :  { %1169 = vadd.xlane.f32.xlu1 %v1382_v27 }
0x1b26   :  { %v1170_v28 = vpop.xlane.xlu1 %1169 }
0x1b27   :  { %1383 = vrcp.f32 %v1170_v28 }
0x1b34   :  { %v1384_v29 = vpop.eup %1383 }
0x1b35   :  { %v1172_v30 = vmul.f32 %v1384_v29, %v1382_v27 }
0x1b37   :  { %1173 = vst [vmem:[%s1651_s6] sm:$0xff] %v1172_v30 }

</bundles_post_ra>
